<compile_context>
chip_gen: v7x
topology: tpu7x:2x2x1
jax: 0.10.0
libtpu: 0.0.40
codegen_flags: <defaults>
</compile_context>

<pallas_src>
import functools

import jax
import jax.numpy as jnp
from jax.experimental import pallas as pl
from jax.experimental.pallas import tpu as pltpu


def _round_up(x, m):
    return (x + m - 1) // m * m


def _gin_kernel(a_ref, xagg_ref, xself_ref, w1_ref, b1_ref, w2_ref, b2_ref,
                o_ref, acc_ref, *, eps):
    k = pl.program_id(1)

    @pl.when(k == 0)
    def _():
        acc_ref[...] = jnp.zeros_like(acc_ref)

    # Neighbor sum-aggregation partial: int8 adjacency tile -> bf16 for the MXU
    # (the upcast is VPU work hidden under DMA/MXU), accumulate in f32 scratch.
    a_bf = a_ref[...].astype(jnp.bfloat16)
    acc_ref[...] += jnp.dot(a_bf, xagg_ref[...],
                            preferred_element_type=jnp.float32)

    @pl.when(k == pl.num_programs(1) - 1)
    def _():
        # GINConv combine: (1 + eps) * x_i + sum_{j in N(i)} x_j   (self term in f32).
        h = (1.0 + eps) * xself_ref[...] + acc_ref[...]
        # MLP: Linear -> ReLU -> Linear (128-lane padded; unmasked bf16 store).
        h1 = jnp.dot(h, w1_ref[...], preferred_element_type=jnp.float32) + b1_ref[...]
        h1 = jnp.maximum(h1, 0.0)
        o_ref[...] = (
            jnp.dot(h1, w2_ref[...], preferred_element_type=jnp.float32) + b2_ref[...]
        ).astype(o_ref.dtype)


def gin_conv_pallas(x, edge_index, w1, b1, w2, b2, eps=0.0, tm=256, tk=2048):
    """GINConv(nn.Sequential(Linear, ReLU, Linear)) forward.

    x: [N, C_in] float32 node features
    edge_index: [2, E] int32, row 0 = source nodes, row 1 = target nodes
    """
    n, c_in = x.shape
    hidden = w2.shape[1]

    # Lane-pad feature dims to 128; keep tm/tk multiples of 128 and pad N so both
    # tile sizes divide n_pad exactly (no partial tiles in the MXU feed).
    c_pad = _round_up(c_in, 128)
    h_pad = _round_up(hidden, 128)

    n128 = _round_up(n, 128)
    tm = min(tm, n128)                 # tm is a multiple of 128
    n_pad = _round_up(n, tm)           # multiple of tm (hence of 128)
    tk = min(tk, n_pad)
    while n_pad % tk != 0:             # largest multiple of 128 <= tk dividing n_pad
        tk -= 128

    # Dense adjacency (target row, source col) built directly in int8.
    # NOTE: exact only for edge multiplicities <= 127 (fine for simple graphs).
    src, dst = edge_index[0], edge_index[1]
    adj = jnp.zeros((n_pad, n_pad), dtype=jnp.int8).at[dst, src].add(1)

    x_pad = jnp.pad(x.astype(jnp.float32), ((0, n_pad - n), (0, c_pad - c_in)))
    x_agg = x_pad.astype(jnp.bfloat16)   # aggregation operand (bf16 MXU stream)
    w1_p = jnp.pad(w1, ((0, c_pad - c_in), (0, h_pad - hidden)))
    w2_p = jnp.pad(w2, ((0, h_pad - hidden), (0, h_pad - hidden)))
    b1_p = jnp.pad(b1, (0, h_pad - hidden)).reshape(1, h_pad)
    b2_p = jnp.pad(b2, (0, h_pad - hidden)).reshape(1, h_pad)

    grid = (n_pad // tm, n_pad // tk)

    # VMEM budget (double-buffered pipelined streams + resident scratch/weights),
    # now independent of N; cap well under v7x's 64 MiB physical VMEM.
    per_step = (
        2 * tm * tk * 1                        # A tile (int8), double-buffered
        + 2 * tk * c_pad * 2                   # x_agg tile (bf16)
        + 2 * tm * c_pad * 4                   # x self rows (f32)
        + 2 * (c_pad * h_pad * 4 + h_pad * 4)  # w1, b1
        + 2 * (h_pad * h_pad * 4 + h_pad * 4)  # w2, b2
        + 2 * tm * h_pad * 2                   # output tile (bf16)
        + tm * c_pad * 4                       # f32 accumulator scratch
    )
    vmem_limit = max(min(per_step + (8 << 20), 48 << 20), 16 << 20)

    kernel = functools.partial(_gin_kernel, eps=float(eps))

    out = pl.pallas_call(
        kernel,
        out_shape=jax.ShapeDtypeStruct((n_pad, h_pad), jnp.bfloat16),
        grid=grid,
        in_specs=[
            pl.BlockSpec((tm, tk), lambda i, k: (i, k)),       # A tile (int8)
            pl.BlockSpec((tk, c_pad), lambda i, k: (k, 0)),    # x_agg K-slab (bf16)
            pl.BlockSpec((tm, c_pad), lambda i, k: (i, 0)),    # x self rows (f32)
            pl.BlockSpec((c_pad, h_pad), lambda i, k: (0, 0)),  # w1, resident
            pl.BlockSpec((1, h_pad), lambda i, k: (0, 0)),      # b1, resident
            pl.BlockSpec((h_pad, h_pad), lambda i, k: (0, 0)),  # w2, resident
            pl.BlockSpec((1, h_pad), lambda i, k: (0, 0)),      # b2, resident
        ],
        out_specs=pl.BlockSpec((tm, h_pad), lambda i, k: (i, 0)),
        scratch_shapes=[pltpu.VMEM((tm, c_pad), jnp.float32)],
        compiler_params=pltpu.CompilerParams(
            dimension_semantics=("parallel", "arbitrary"),
            vmem_limit_bytes=vmem_limit,
        ),
    )(adj, x_agg, x_pad, w1_p, b1_p, w2_p, b2_p)

    return out[:n, :hidden].astype(jnp.float32)


def _reference(x, edge_index, w1, b1, w2, b2, eps=0.0):
    src, dst = edge_index[0], edge_index[1]
    agg = jnp.zeros_like(x).at[dst].add(x[src])
    h = (1.0 + eps) * x + agg
    h = jnp.maximum(h @ w1 + b1, 0.0)
    return h @ w2 + b2


if __name__ == "__main__":
    # Shapes implied by the module: input_channels=65, hidden_channels=64.
    N = 8            # number of nodes
    E = 16           # number of edges
    C_IN = 65
    HIDDEN = 64

    key = jax.random.PRNGKey(0)
    k_x, k_e1, k_e2, k_w1, k_b1, k_w2, k_b2 = jax.random.split(key, 7)

    x = jax.random.normal(k_x, (N, C_IN), dtype=jnp.float32)
    edge_index = jnp.stack(
        [
            jax.random.randint(k_e1, (E,), 0, N, dtype=jnp.int32),
            jax.random.randint(k_e2, (E,), 0, N, dtype=jnp.int32),
        ],
        axis=0,
    )

    # Deterministic parameter init (synthetic; mirrors Linear(65,64) and Linear(64,64)).
    w1 = jax.random.normal(k_w1, (C_IN, HIDDEN), dtype=jnp.float32) * 0.1
    b1 = jax.random.normal(k_b1, (HIDDEN,), dtype=jnp.float32) * 0.1
    w2 = jax.random.normal(k_w2, (HIDDEN, HIDDEN), dtype=jnp.float32) * 0.1
    b2 = jax.random.normal(k_b2, (HIDDEN,), dtype=jnp.float32) * 0.1

    out = gin_conv_pallas(x, edge_index, w1, b1, w2, b2)
    out = jax.block_until_ready(out)

    ref = _reference(x, edge_index, w1, b1, w2, b2)
    assert out.shape == (N, HIDDEN)
    # Tolerance accounts for the bf16 aggregation operand and bf16 output store
    # (accumulation and the self term stay f32).
    assert jnp.allclose(out, ref, atol=3e-2, rtol=3e-2), float(
        jnp.max(jnp.abs(out - ref))
    )

    print("KERNEL_OK")
</pallas_src>

<mosaic_0001>
module attributes {stable_mosaic.version = 11 : i64} {
  func.func @_gin_kernel(%arg0: i32, %arg1: i32, %arg2: memref<128x128xi8, #tpu.memory_space<vmem>>, %arg3: memref<128x128xbf16, #tpu.memory_space<vmem>>, %arg4: memref<128x128xf32, #tpu.memory_space<vmem>>, %arg5: memref<128x128xf32, #tpu.memory_space<vmem>>, %arg6: memref<1x128xf32, #tpu.memory_space<vmem>>, %arg7: memref<128x128xf32, #tpu.memory_space<vmem>>, %arg8: memref<1x128xf32, #tpu.memory_space<vmem>>, %arg9: memref<128x128xbf16, #tpu.memory_space<vmem>>, %arg10: memref<128x128xf32, #tpu.memory_space<vmem>>) attributes {dimension_semantics = [#tpu.dimension_semantics<parallel>, #tpu.dimension_semantics<arbitrary>], iteration_bounds = array<i64: 1, 1>, scalar_prefetch = 0 : i64, scratch_operands = 1 : i64, tpu.core_type = #tpu.core_type<tc>, window_params = [{transform_indices = @transform_0, window_bounds = array<i64: 128, 128>}, {transform_indices = @transform_1, window_bounds = array<i64: 128, 128>}, {transform_indices = @transform_2, window_bounds = array<i64: 128, 128>}, {pipeline_mode = #tpu.pipeline_mode<synchronous>, transform_indices = @transform_3, window_bounds = array<i64: 128, 128>}, {pipeline_mode = #tpu.pipeline_mode<synchronous>, transform_indices = @transform_4, window_bounds = array<i64: 1, 128>}, {pipeline_mode = #tpu.pipeline_mode<synchronous>, transform_indices = @transform_5, window_bounds = array<i64: 128, 128>}, {pipeline_mode = #tpu.pipeline_mode<synchronous>, transform_indices = @transform_6, window_bounds = array<i64: 1, 128>}, {transform_indices = @transform_7, window_bounds = array<i64: 128, 128>}]} {
    %c0_i32 = arith.constant 0 : i32
    %0 = arith.cmpi eq, %arg1, %c0_i32 : i32
    %1 = arith.extui %0 : i1 to i32
    %c0_i32_0 = arith.constant 0 : i32
    %2 = arith.cmpi ne, %1, %c0_i32_0 : i32
    scf.if %2 {
      %cst_10 = arith.constant 0.000000e+00 : f32
      %13 = vector.broadcast %cst_10 : f32 to vector<128x128xf32>
      %c0_11 = arith.constant 0 : index
      %c0_12 = arith.constant 0 : index
      %14 = vector.load %arg10[%c0_11, %c0_12] : memref<128x128xf32, #tpu.memory_space<vmem>>, vector<128x128xf32>
      tpu.vector_store %arg10[%c0_11, %c0_12], %13 {strides = array<i32>} : memref<128x128xf32, #tpu.memory_space<vmem>>, vector<128x128xf32>,
    } else {
    }
    %c0 = arith.constant 0 : index
    %c0_1 = arith.constant 0 : index
    %3 = vector.load %arg2[%c0, %c0_1] : memref<128x128xi8, #tpu.memory_space<vmem>>, vector<128x128xi8>
    %4 = arith.sitofp %3 : vector<128x128xi8> to vector<128x128xbf16>
    %c0_2 = arith.constant 0 : index
    %c0_3 = arith.constant 0 : index
    %5 = vector.load %arg10[%c0_2, %c0_3] : memref<128x128xf32, #tpu.memory_space<vmem>>, vector<128x128xf32>
    %c0_4 = arith.constant 0 : index
    %c0_5 = arith.constant 0 : index
    %6 = vector.load %arg3[%c0_4, %c0_5] : memref<128x128xbf16, #tpu.memory_space<vmem>>, vector<128x128xbf16>
    %cst = arith.constant dense<0.000000e+00> : vector<128x128xf32>
    %7 = tpu.matmul %4, %6, %cst {dimension_numbers = #tpu.dot_dimension_numbers<[1], [0], [0], [1], [0, 0, 1, 1], [], []>} : vector<128x128xbf16>, vector<128x128xbf16>, vector<128x128xf32> -> vector<128x128xf32>
    %8 = arith.addf %5, %7 : vector<128x128xf32>
    %c0_6 = arith.constant 0 : index
    %c0_7 = arith.constant 0 : index
    %9 = vector.load %arg10[%c0_6, %c0_7] : memref<128x128xf32, #tpu.memory_space<vmem>>, vector<128x128xf32>
    tpu.vector_store %arg10[%c0_6, %c0_7], %8 {strides = array<i32>} : memref<128x128xf32, #tpu.memory_space<vmem>>, vector<128x128xf32>,
    %c0_i32_8 = arith.constant 0 : i32
    %10 = arith.cmpi eq, %arg1, %c0_i32_8 : i32
    %11 = arith.extui %10 : i1 to i32
    %c0_i32_9 = arith.constant 0 : i32
    %12 = arith.cmpi ne, %11, %c0_i32_9 : i32
    scf.if %12 {
      %c0_10 = arith.constant 0 : index
      %c0_11 = arith.constant 0 : index
      %13 = vector.load %arg4[%c0_10, %c0_11] : memref<128x128xf32, #tpu.memory_space<vmem>>, vector<128x128xf32>
      %cst_12 = arith.constant 1.000000e+00 : f32
      %14 = vector.broadcast %cst_12 : f32 to vector<128x128xf32>
      %15 = arith.mulf %14, %13 : vector<128x128xf32>
      %c0_13 = arith.constant 0 : index
      %c0_14 = arith.constant 0 : index
      %16 = vector.load %arg10[%c0_13, %c0_14] : memref<128x128xf32, #tpu.memory_space<vmem>>, vector<128x128xf32>
      %17 = arith.addf %15, %16 : vector<128x128xf32>
      %c0_15 = arith.constant 0 : index
      %c0_16 = arith.constant 0 : index
      %18 = vector.load %arg5[%c0_15, %c0_16] : memref<128x128xf32, #tpu.memory_space<vmem>>, vector<128x128xf32>
      %cst_17 = arith.constant dense<0.000000e+00> : vector<128x128xf32>
      %19 = tpu.matmul %17, %18, %cst_17 {dimension_numbers = #tpu.dot_dimension_numbers<[1], [0], [0], [1], [0, 0, 1, 1], [], []>} : vector<128x128xf32>, vector<128x128xf32>, vector<128x128xf32> -> vector<128x128xf32>
      %c0_18 = arith.constant 0 : index
      %c0_19 = arith.constant 0 : index
      %20 = vector.load %arg6[%c0_18, %c0_19] : memref<1x128xf32, #tpu.memory_space<vmem>>, vector<1x128xf32>
      %21 = vector.broadcast %20 : vector<1x128xf32> to vector<128x128xf32>
      %22 = arith.addf %19, %21 : vector<128x128xf32>
      %cst_20 = arith.constant 0.000000e+00 : f32
      %23 = vector.broadcast %cst_20 : f32 to vector<128x128xf32>
      %24 = arith.maximumf %22, %23 : vector<128x128xf32>
      %c0_21 = arith.constant 0 : index
      %c0_22 = arith.constant 0 : index
      %25 = vector.load %arg7[%c0_21, %c0_22] : memref<128x128xf32, #tpu.memory_space<vmem>>, vector<128x128xf32>
      %cst_23 = arith.constant dense<0.000000e+00> : vector<128x128xf32>
      %26 = tpu.matmul %24, %25, %cst_23 {dimension_numbers = #tpu.dot_dimension_numbers<[1], [0], [0], [1], [0, 0, 1, 1], [], []>} : vector<128x128xf32>, vector<128x128xf32>, vector<128x128xf32> -> vector<128x128xf32>
      %c0_24 = arith.constant 0 : index
      %c0_25 = arith.constant 0 : index
      %27 = vector.load %arg8[%c0_24, %c0_25] : memref<1x128xf32, #tpu.memory_space<vmem>>, vector<1x128xf32>
      %28 = vector.broadcast %27 : vector<1x128xf32> to vector<128x128xf32>
      %29 = arith.addf %26, %28 : vector<128x128xf32>
      %30 = arith.truncf %29 : vector<128x128xf32> to vector<128x128xbf16>
      %c0_26 = arith.constant 0 : index
      %c0_27 = arith.constant 0 : index
      %31 = vector.load %arg9[%c0_26, %c0_27] : memref<128x128xbf16, #tpu.memory_space<vmem>>, vector<128x128xbf16>
      tpu.vector_store %arg9[%c0_26, %c0_27], %30 {strides = array<i32>} : memref<128x128xbf16, #tpu.memory_space<vmem>>, vector<128x128xbf16>,
    } else {
    }
    return
  }
  func.func @transform_0(%arg0: i32, %arg1: i32) -> (i32, i32) {
    %c0_i32 = arith.constant 0 : i32
    return %arg0, %arg1 : i32, i32
  }
  func.func @transform_1(%arg0: i32, %arg1: i32) -> (i32, i32) {
    %c0_i32 = arith.constant 0 : i32
    %c0_i32_0 = arith.constant 0 : i32
    return %arg1, %c0_i32 : i32, i32
  }
  func.func @transform_2(%arg0: i32, %arg1: i32) -> (i32, i32) {
    %c0_i32 = arith.constant 0 : i32
    %c0_i32_0 = arith.constant 0 : i32
    return %arg0, %c0_i32 : i32, i32
  }
  func.func @transform_3(%arg0: i32, %arg1: i32) -> (i32, i32) {
    %c0_i32 = arith.constant 0 : i32
    %c0_i32_0 = arith.constant 0 : i32
    %c0_i32_1 = arith.constant 0 : i32
    return %c0_i32, %c0_i32_0 : i32, i32
  }
  func.func @transform_4(%arg0: i32, %arg1: i32) -> (i32, i32) {
    %c0_i32 = arith.constant 0 : i32
    %c0_i32_0 = arith.constant 0 : i32
    %c0_i32_1 = arith.constant 0 : i32
    return %c0_i32, %c0_i32_0 : i32, i32
  }
  func.func @transform_5(%arg0: i32, %arg1: i32) -> (i32, i32) {
    %c0_i32 = arith.constant 0 : i32
    %c0_i32_0 = arith.constant 0 : i32
    %c0_i32_1 = arith.constant 0 : i32
    return %c0_i32, %c0_i32_0 : i32, i32
  }
  func.func @transform_6(%arg0: i32, %arg1: i32) -> (i32, i32) {
    %c0_i32 = arith.constant 0 : i32
    %c0_i32_0 = arith.constant 0 : i32
    %c0_i32_1 = arith.constant 0 : i32
    return %c0_i32, %c0_i32_0 : i32, i32
  }
  func.func @transform_7(%arg0: i32, %arg1: i32) -> (i32, i32) {
    %c0_i32 = arith.constant 0 : i32
    %c0_i32_0 = arith.constant 0 : i32
    return %arg0, %c0_i32 : i32, i32
  }
}

</mosaic_0001>

<bundles_post_ra>
// kernel: tpu_custom_call.1
= control target key start
LH: loop header
LB: loop body
LE: loop exit
PB: predicated region body
PF: predicated region fallthrough
CT: control target
= control target key end

     0   :  { %12 = vsyncpa [#allocation4], 0  ;;  %s1560_s0 = inlined_call_operand.hbm [shape: s8[128,128], index: 0, kind: input, shape index: {}]   ;;  %s1561_s1 = inlined_call_operand.hbm [shape: bf16[128,128], index: 1, kind: input, shape index: {}]   ;;  %s1562_s2 = inlined_call_operand.hbm [shape: f32[128,128], index: 2, kind: input, shape index: {}]   ;;  %s1563_s3 = inlined_call_operand.hbm [shape: f32[128,128], index: 3, kind: input, shape index: {}]   ;;  %s1564_s4 = inlined_call_operand.vmem [shape: f32[1,128], index: 4, kind: input, shape index: {}]   ;;  %s1565_s5 = inlined_call_operand.hbm [shape: f32[128,128], index: 5, kind: input, shape index: {}]   ;;  %s1566_s6 = inlined_call_operand.vmem [shape: f32[1,128], index: 6, kind: input, shape index: {}]   ;;  %s1567_s7 = inlined_call_operand.hbm [shape: bf16[128,128], index: 7, kind: output, shape index: {}]  }
   0x1   :  { %13 = vsyncpa [#allocation7], 0 }
   0x2   :  { %14 = vsyncpa [#allocation10], 0 }
   0x3   :  { %15 = vsyncpa [#allocation5], 0  ;;  %s1390_s24 = smov [#allocation6]   ;;  %s1250_s28 = scalar_lea.hbm %s1561_s1, 1024 }
   0x4   :  { %s33_s25 = sshll.u32 %s1390_s24, 4  ;;  %p1251_p0 = scmp.ne.s32.totalorder %s1561_s1, %s1250_s28  ;;  %s34_s25 = int_to_ptr.vmem [resolvable:$true] %s33_s25 }
   0x5   :  { %p1254_p1 = scmp.lt.u32.totalorder %s1250_s28, %s1561_s1 }
   0x7   :  { %p1256_p2 = pnand %p1254_p1, %p1251_p0 }
   0x9   :  { %1259 = shalt.err (!%p1256_p2)
}
   0xa   :  { %s1260_s10 = scalar_lea.vmem %s34_s25, 1024  ;;  %p1265_p4 = scmp.lt.s32.totalorder %s34_s25, %s34_s25 }
   0xb   :  { %p1261_p3 = scmp.ne.s32.totalorder %s34_s25, %s1260_s10  ;;  %p1266_p5 = scmp.lt.s32.totalorder %s1260_s10, %s1260_s10 }
   0xd   :  { %p1267_p6 = por %p1266_p5, %p1265_p4 }
   0xf   :  { %p1268_p7 = pnand %p1267_p6, %p1261_p3 }
  0x11   :  { %1271 = shalt.err (!%p1268_p7)
}
  0x12   :  { %s1391_s11 = smov 64   ;;  %s1392_s12 = smov 4  }
  0x13   :  { %39 = dma.hbm_to_vmem [thread:$0]  %s1561_s1, 1024, %s34_s25, [#allocation7], %s1391_s11, %s1391_s11, %s1392_s12  }
  0x14   :  { %s1393_s15 = smov [#allocation9]   ;;  %s1394_s17 = smov [#allocation3]  }
  0x15   :  { %s57_s16 = sshll.u32 %s1393_s15, 4  ;;  %s21_s18 = sshll.u32 %s1394_s17, 4  ;;  %s58_s16 = int_to_ptr.vmem [resolvable:$true] %s57_s16  ;;  %s22_s18 = int_to_ptr.vmem [resolvable:$true] %s21_s18 }
  0x16   :  { %s1272_s21 = scalar_lea.hbm %s1563_s3, 2048 }
  0x17   :  { %p1273_p8 = scmp.ne.s32.totalorder %s1563_s3, %s1272_s21  ;;  %p1276_p9 = scmp.lt.u32.totalorder %s1272_s21, %s1563_s3 }
  0x19   :  { %p1278_p10 = pnand %p1276_p9, %p1273_p8 }
  0x1b   :  { %1281 = shalt.err (!%p1278_p10)
}
  0x1c   :  { %s1282_s1 = scalar_lea.vmem %s58_s16, 2048  ;;  %p1287_p12 = scmp.lt.s32.totalorder %s58_s16, %s58_s16 }
  0x1d   :  { %p1283_p11 = scmp.ne.s32.totalorder %s58_s16, %s1282_s1  ;;  %p1288_p13 = scmp.lt.s32.totalorder %s1282_s1, %s1282_s1 }
  0x1f   :  { %p1289_p0 = por %p1288_p13, %p1287_p12 }
  0x21   :  { %p1290_p1 = pnand %p1289_p0, %p1283_p11 }
  0x23   :  { %1293 = shalt.err (!%p1290_p1)
}
  0x24   :  { %s1395_s25 = smov 128   ;;  %s1396_s27 = smov 8  }
  0x25   :  { %63 = dma.hbm_to_vmem [thread:$0]  %s1563_s3, 2048, %s58_s16, [#allocation10], %s1395_s25, %s1395_s25, %s1396_s27  }
  0x26   :  { %s1294_s9 = scalar_lea.hbm %s1560_s0, 512 }
  0x27   :  { %p1295_p2 = scmp.ne.s32.totalorder %s1560_s0, %s1294_s9  ;;  %p1298_p3 = scmp.lt.u32.totalorder %s1294_s9, %s1560_s0 }
  0x29   :  { %p1300_p4 = pnand %p1298_p3, %p1295_p2 }
  0x2b   :  { %1303 = shalt.err (!%p1300_p4)
}
  0x2c   :  { %s1304_s17 = scalar_lea.vmem %s22_s18, 512  ;;  %p1309_p6 = scmp.lt.s32.totalorder %s22_s18, %s22_s18 }
  0x2d   :  { %p1305_p5 = scmp.ne.s32.totalorder %s22_s18, %s1304_s17  ;;  %p1310_p7 = scmp.lt.s32.totalorder %s1304_s17, %s1304_s17 }
  0x2f   :  { %p1311_p8 = por %p1310_p7, %p1309_p6 }
  0x31   :  { %p1312_p9 = pnand %p1311_p8, %p1305_p5 }
  0x33   :  { %1315 = shalt.err (!%p1312_p9)
}
  0x34   :  { %27 = dma.hbm_to_vmem [thread:$0]  %s1560_s0, 512, %s22_s18, [#allocation4], %s1395_s25, %s1395_s25, %s1396_s27  }
  0x35   :  { %s1397_s19 = smov [#allocation8]   ;;  %s1398_s21 = smov [#allocation11]  }
  0x36   :  { %s45_s20 = sshll.u32 %s1397_s19, 4  ;;  %s71_s22 = sshll.u32 %s1398_s21, 4  ;;  %s46_s20 = int_to_ptr.vmem [resolvable:$true] %s45_s20  ;;  %s72_s22 = int_to_ptr.vmem [resolvable:$true] %s71_s22 }
  0x37   :  { %s1316_s26 = scalar_lea.hbm %s1562_s2, 2048 }
  0x38   :  { %p1317_p10 = scmp.ne.s32.totalorder %s1562_s2, %s1316_s26  ;;  %p1320_p11 = scmp.lt.u32.totalorder %s1316_s26, %s1562_s2 }
  0x3a   :  { %p1322_p12 = pnand %p1320_p11, %p1317_p10 }
  0x3c   :  { %1325 = shalt.err (!%p1322_p12)
}
  0x3d   :  { %s1326_s0 = scalar_lea.vmem %s46_s20, 2048  ;;  %p1331_p0 = scmp.lt.s32.totalorder %s46_s20, %s46_s20 }
  0x3e   :  { %p1327_p13 = scmp.ne.s32.totalorder %s46_s20, %s1326_s0  ;;  %p1332_p1 = scmp.lt.s32.totalorder %s1326_s0, %s1326_s0 }
  0x40   :  { %p1333_p2 = por %p1332_p1, %p1331_p0 }
  0x42   :  { %p1334_p3 = pnand %p1333_p2, %p1327_p13 }
  0x44   :  { %1337 = shalt.err (!%p1334_p3)
}
  0x45   :  { %51 = dma.hbm_to_vmem [thread:$0]  %s1562_s2, 2048, %s46_s20, [#allocation7], %s1395_s25, %s1395_s25, %s1396_s27  }
  0x46   :  { %s1338_s13 = scalar_lea.hbm %s1565_s5, 2048 }
  0x47   :  { %p1339_p4 = scmp.ne.s32.totalorder %s1565_s5, %s1338_s13  ;;  %p1342_p5 = scmp.lt.u32.totalorder %s1338_s13, %s1565_s5 }
  0x49   :  { %p1344_p6 = pnand %p1342_p5, %p1339_p4 }
  0x4b   :  { %1347 = shalt.err (!%p1344_p6)
}
  0x4c   :  { %s1348_s16 = scalar_lea.vmem %s72_s22, 2048  ;;  %p1353_p8 = scmp.lt.s32.totalorder %s72_s22, %s72_s22 }
  0x4d   :  { %p1349_p7 = scmp.ne.s32.totalorder %s72_s22, %s1348_s16  ;;  %p1354_p9 = scmp.lt.s32.totalorder %s1348_s16, %s1348_s16 }
  0x4f   :  { %p1355_p10 = por %p1354_p9, %p1353_p8 }
  0x51   :  { %p1356_p11 = pnand %p1355_p10, %p1349_p7 }
  0x53   :  { %1359 = shalt.err (!%p1356_p11)
}
  0x54   :  { %77 = dma.hbm_to_vmem [thread:$0]  %s1565_s5, 2048, %s72_s22, [#allocation10], %s1395_s25, %s1395_s25, %s1396_s27  }
  0x55   :  { %1382 = dma.done.wait [#allocation4], 512  }
  0x56   :  { %1383 = vsyncadd [#allocation4], 4294966784 }
  0x57   :  { %1384 = dma.done.wait [#allocation7], 3072  }
  0x58   :  { %1385 = vsyncadd [#allocation7], 4294964224 }
  0x59   :  { %1386 = dma.done.wait [#allocation10], 4096  }
  0x5a   :  { %1387 = vsyncadd [#allocation10], 4294963200  ;;  %v1242_v0 = vld [vmem:[#allocation6] sm:$0xff]   ;;  %v1243_v1 = vld [vmem:[#allocation6 + $0x8] sm:$0xff]  }
  0x5b   :  { %1008 = vmatprep.subr.bf16.mxu0 %v1242_v0  ;;  %v1244_v2 = vld [vmem:[#allocation6 + $0x10] sm:$0xff]   ;;  %v1245_v3 = vld [vmem:[#allocation6 + $0x18] sm:$0xff]   ;;  %v116_v4 = vld [vmem:[#allocation3] sm:$0xff] }
  0x5c   :  { %1009 = vmatpush3.bf16.msra.mxu0 %v1242_v0  ;;  %v120_v5 = vunpack.c.l.s8.bf16 %v116_v4  ;;  %v388_v6 = vld [vmem:[#allocation9] sm:$0xff]  ;;  %v389_v7 = vld [vmem:[#allocation9 + $0x8] sm:$0xff]  ;;  %v390_v8 = vld [vmem:[#allocation9 + $0x10] sm:$0xff]  ;;  %v121_v31 = vunpack.c.h.s8.bf16 %v116_v4 }
  0x5d   :  { %1010 = vmatprep.subr.bf16.mxu0 %v1243_v1  ;;  %v391_v9 = vld [vmem:[#allocation9 + $0x18] sm:$0xff]  ;;  %v1152_v10 = vpack.c.bf16 %v389_v7, %v388_v6  ;;  %v1246_v12 = vld [vmem:[#allocation6 + $0x20] sm:$0xff]   ;;  %v393_v14 = vld [vmem:[#allocation9 + $0x28] sm:$0xff] }
  0x5e   :  { %1024 = vmatprep.mubr.bf16.mxu0 %v120_v5  ;;  %v1156_v11 = vpack.c.bf16 %v391_v9, %v390_v8  ;;  %v392_v13 = vld [vmem:[#allocation9 + $0x20] sm:$0xff]  ;;  %v1247_v16 = vld [vmem:[#allocation6 + $0x28] sm:$0xff]   ;;  %v394_v17 = vld [vmem:[#allocation9 + $0x30] sm:$0xff] }
  0x5f   :  { %1153 = vmatprep.subr.bf16.mxu1 %v1152_v10  ;;  %v1160_v15 = vpack.c.bf16 %v393_v14, %v392_v13  ;;  %v395_v18 = vld [vmem:[#allocation9 + $0x38] sm:$0xff]  ;;  %v1248_v20 = vld [vmem:[#allocation6 + $0x30] sm:$0xff]   ;;  %v396_v21 = vld [vmem:[#allocation9 + $0x40] sm:$0xff] }
  0x60   :  { %1011 = vmatpush3.bf16.msra.mxu0 %v1243_v1  ;;  %1155 = vmatpush3.bf16.msra.mxu1 %v1152_v10  ;;  %v1164_v19 = vpack.c.bf16 %v395_v18, %v394_v17  ;;  %v397_v22 = vld [vmem:[#allocation9 + $0x48] sm:$0xff]  ;;  %v1249_v24 = vld [vmem:[#allocation6 + $0x38] sm:$0xff]   ;;  %v398_v25 = vld [vmem:[#allocation9 + $0x50] sm:$0xff] }
  0x61   :  { %1012 = vmatprep.subr.bf16.mxu0 %v1244_v2  ;;  %1157 = vmatprep.subr.bf16.mxu1 %v1156_v11  ;;  %v1168_v23 = vpack.c.bf16 %v397_v22, %v396_v21  ;;  %v399_v26 = vld [vmem:[#allocation9 + $0x58] sm:$0xff]  ;;  %v117_v28 = vld [vmem:[#allocation3 + $0x8] sm:$0xff]  ;;  %v400_v29 = vld [vmem:[#allocation9 + $0x60] sm:$0xff] }
  0x62   :  { %v1172_v27 = vpack.c.bf16 %v399_v26, %v398_v25  ;;  %v401_v30 = vld [vmem:[#allocation9 + $0x68] sm:$0xff]  ;;  %v122_v32 = vunpack.c.l.s8.bf16 %v117_v28  ;;  %v118_v34 = vld [vmem:[#allocation3 + $0x10] sm:$0xff]  ;;  %v123_v35 = vunpack.c.h.s8.bf16 %v117_v28  ;;  %v119_v37 = vld [vmem:[#allocation3 + $0x18] sm:$0xff] }
  0x63   :  { %v1176_v33 = vpack.c.bf16 %v401_v30, %v400_v29  ;;  %v124_v36 = vunpack.c.l.s8.bf16 %v118_v34  ;;  %v125_v38 = vunpack.c.h.s8.bf16 %v118_v34  ;;  %v126_v39 = vunpack.c.l.s8.bf16 %v119_v37  ;;  %v402_v41 = vld [vmem:[#allocation9 + $0x70] sm:$0xff]  ;;  %v403_v42 = vld [vmem:[#allocation9 + $0x78] sm:$0xff]  ;;  %v572_v44 = vld [vmem:[#allocation11] sm:$0xff] }
  0x64   :  { %1013 = vmatpush3.bf16.msra.mxu0 %v1244_v2  ;;  %1159 = vmatpush3.bf16.msra.mxu1 %v1156_v11  ;;  %v127_v40 = vunpack.c.h.s8.bf16 %v119_v37  ;;  %v1180_v43 = vpack.c.bf16 %v403_v42, %v402_v41  ;;  %v573_v45 = vld [vmem:[#allocation11 + $0x8] sm:$0xff]  ;;  %v574_v46 = vld [vmem:[#allocation11 + $0x10] sm:$0xff]  ;;  %v575_v48 = vld [vmem:[#allocation11 + $0x18] sm:$0xff] }
  0x65   :  { %1014 = vmatprep.subr.bf16.mxu0 %v1245_v3  ;;  %1161 = vmatprep.subr.bf16.mxu1 %v1160_v15  ;;  %v1184_v47 = vpack.c.bf16 %v573_v45, %v572_v44  ;;  %v1188_v49 = vpack.c.bf16 %v575_v48, %v574_v46  ;;  %v576_v50 = vld [vmem:[#allocation11 + $0x20] sm:$0xff]  ;;  %v577_v51 = vld [vmem:[#allocation11 + $0x28] sm:$0xff]  ;;  %v578_v53 = vld [vmem:[#allocation11 + $0x30] sm:$0xff] }
  0x66   :  { %v1192_v52 = vpack.c.bf16 %v577_v51, %v576_v50  ;;  %v579_v54 = vld [vmem:[#allocation11 + $0x38] sm:$0xff]  ;;  %v580_v56 = vld [vmem:[#allocation11 + $0x40] sm:$0xff]  ;;  %v581_v57 = vld [vmem:[#allocation11 + $0x48] sm:$0xff] }
  0x67   :  { %v1515_v55 = vpack.c.bf16 %v579_v54, %v578_v53  ;;  %v1518_v58 = vpack.c.bf16 %v581_v57, %v580_v56  ;;  %v582_v59 = vld [vmem:[#allocation11 + $0x50] sm:$0xff]  ;;  %v583_v60 = vld [vmem:[#allocation11 + $0x58] sm:$0xff]  ;;  %v584_v62 = vld [vmem:[#allocation11 + $0x60] sm:$0xff] }
  0x68   :  { %1015 = vmatpush3.bf16.msra.mxu0 %v1245_v3  ;;  %1163 = vmatpush3.bf16.msra.mxu1 %v1160_v15  ;;  %v1522_v61 = vpack.c.bf16 %v583_v60, %v582_v59  ;;  %v585_v63 = vld [vmem:[#allocation11 + $0x68] sm:$0xff]  ;;  %v340_v1 = vld [vmem:[#allocation8] sm:$0xff]  ;;  %v342_v5 = vld [vmem:[#allocation8 + $0x10] sm:$0xff] }
  0x69   :  { %1016 = vmatprep.subr.bf16.mxu0 %v1246_v12  ;;  %1165 = vmatprep.subr.bf16.mxu1 %v1164_v19  ;;  %v1526_v0 = vpack.c.bf16 %v585_v63, %v584_v62  ;;  %v341_v4 = vld [vmem:[#allocation8 + $0x8] sm:$0xff]  ;;  %v343_v11 = vld [vmem:[#allocation8 + $0x18] sm:$0xff]  ;;  %v346_v17 = vld [vmem:[#allocation8 + $0x30] sm:$0xff] }
  0x6a   :  { %v349_v28 = vld [vmem:[#allocation8 + $0x48] sm:$0xff]  ;;  %v350_v29 = vld [vmem:[#allocation8 + $0x50] sm:$0xff]  ;;  %v587_v50 = vld [vmem:[#allocation11 + $0x78] sm:$0xff] }
  0x6b   :  { %v354_v41 = vld [vmem:[#allocation8 + $0x70] sm:$0xff] }
  0x6c   :  { %1017 = vmatpush3.bf16.msra.mxu0 %v1246_v12  ;;  %1167 = vmatpush3.bf16.msra.mxu1 %v1164_v19  ;;  %v344_v12 = vld [vmem:[#allocation8 + $0x20] sm:$0xff] }
  0x6d   :  { %1018 = vmatprep.subr.bf16.mxu0 %v1247_v16  ;;  %1169 = vmatprep.subr.bf16.mxu1 %v1168_v23 }
  0x70   :  { %1019 = vmatpush3.bf16.msra.mxu0 %v1247_v16  ;;  %1171 = vmatpush3.bf16.msra.mxu1 %v1168_v23  ;;  %v345_v16 = vld [vmem:[#allocation8 + $0x28] sm:$0xff]  ;;  %v347_v23 = vld [vmem:[#allocation8 + $0x38] sm:$0xff] }
  0x71   :  { %1020 = vmatprep.subr.bf16.mxu0 %v1248_v20  ;;  %1173 = vmatprep.subr.bf16.mxu1 %v1172_v27 }
  0x74   :  { %1021 = vmatpush3.bf16.msra.mxu0 %v1248_v20  ;;  %1175 = vmatpush3.bf16.msra.mxu1 %v1172_v27 }
  0x75   :  { %1022 = vmatprep.subr.bf16.mxu0 %v1249_v24  ;;  %1177 = vmatprep.subr.bf16.mxu1 %v1176_v33 }
  0x78   :  { %1023 = vmatpush3.bf16.msra.mxu0 %v1249_v24  ;;  %1179 = vmatpush3.bf16.msra.mxu1 %v1176_v33  ;;  %v348_v24 = vld [vmem:[#allocation8 + $0x40] sm:$0xff] }
  0x79   :  { %1181 = vmatprep.subr.bf16.mxu1 %v1180_v43  ;;  %1185 = vmatprep.subr.bf16.mxu0 %v1184_v47 }
  0x7b   :  { %1025 = vmatmul.mubr.bf16.vlgmr.msra.gmra.mrb[0].mxu0 %v121_v31 }
  0x7c   :  { %1028 = vmatprep.mubr.bf16.mxu0 %v122_v32  ;;  %1183 = vmatpush3.bf16.msra.mxu1 %v1180_v43 }
  0x7d   :  { %1216 = vmatprep.subr.bf16.mxu1 %v1184_v47  ;;  %1187 = vmatpush3.bf16.msra.mxu0 %v1184_v47 }
  0x7e   :  { %1189 = vmatprep.subr.bf16.mxu0 %v1188_v49 }
  0x81   :  { %1191 = vmatpush3.bf16.msra.mxu0 %v1188_v49 }
  0x82   :  { %1193 = vmatprep.subr.bf16.mxu0 %v1192_v52 }
  0x83   :  { %1029 = vmatmul.mubr.bf16.gmra.mrb[4].mxu0 %v123_v35  ;;  %v351_v35 = vld [vmem:[#allocation8 + $0x58] sm:$0xff] }
  0x84   :  { %1032 = vmatprep.mubr.bf16.mxu0 %v124_v36  ;;  %v352_v36 = vld [vmem:[#allocation8 + $0x60] sm:$0xff] }
  0x85   :  { %1195 = vmatpush3.bf16.msra.mxu0 %v1192_v52 }
  0x86   :  { %1197 = vmatprep.subr.bf16.mxu0 %v1515_v55 }
  0x89   :  { %1199 = vmatpush3.bf16.msra.mxu0 %v1515_v55 }
  0x8a   :  { %1201 = vmatprep.subr.bf16.mxu0 %v1518_v58 }
  0x8b   :  { %1033 = vmatmul.mubr.bf16.gmra.mrb[8].mxu0 %v125_v38 }
  0x8c   :  { %1036 = vmatprep.mubr.bf16.mxu0 %v126_v39 }
  0x8d   :  { %1203 = vmatpush3.bf16.msra.mxu0 %v1518_v58 }
  0x8e   :  { %1205 = vmatprep.subr.bf16.mxu0 %v1522_v61 }
  0x91   :  { %1207 = vmatpush3.bf16.msra.mxu0 %v1522_v61 }
  0x92   :  { %1209 = vmatprep.subr.bf16.mxu0 %v1526_v0 }
  0x93   :  { %1037 = vmatmul.mubr.bf16.gmra.mrb[12].mxu0 %v127_v40  ;;  %v353_v40 = vld [vmem:[#allocation8 + $0x68] sm:$0xff] }
  0x95   :  { %1211 = vmatpush3.bf16.msra.mxu0 %v1526_v0 }
 0x14e   :  { %v1026_v2 = vpop.f32.mrb[0].mxu0 }
 0x14f   :  { %v242_v3 = vpop.f32.mrb[1].mxu0  ;;  %v374_v10 = vadd.f32 %v1026_v2, %v342_v5 }
 0x150   :  { %v1027_v6 = vpop.f32.mrb[2].mxu0  ;;  %v372_v7 = vadd.f32 %v340_v1, %v242_v3 }
 0x151   :  { %v245_v8 = vpop.f32.mrb[3].mxu0  ;;  %v375_v13 = vadd.f32 %v1027_v6, %v343_v11 }
 0x152   :  { %v373_v9 = vadd.f32 %v341_v4, %v245_v8  ;;  %1072 = vmatprep.mubr.f32.mxu1 %v372_v7 }
 0x154   :  { %1073 = vmatmul.mubr.f32.vlgmr.msra.gmra.mrb[0].mxu1 %v373_v9 }
 0x155   :  { %1075 = vmatprep.mubr.f32.mxu1 %v374_v10  ;;  %1224 = vmatpush3.bf16.msra.mxu1 %v1184_v47  ;;  %v355_v47 = vld [vmem:[#allocation8 + $0x78] sm:$0xff] }
 0x156   :  { %v1030_v14 = vpop.f32.mrb[4].mxu0  ;;  %1217 = vmatprep.subr.bf16.mxu1 %v1188_v49 }
 0x157   :  { %v258_v15 = vpop.f32.mrb[5].mxu0  ;;  %v378_v22 = vadd.f32 %v1030_v14, %v346_v17 }
 0x158   :  { %v376_v18 = vadd.f32 %v344_v12, %v258_v15  ;;  %v1031_v19 = vpop.f32.mrb[6].mxu0  ;;  %1076 = vmatmul.mubr.f32.gmra.mrb[2].mxu1 %v375_v13 }
 0x159   :  { %v261_v20 = vpop.f32.mrb[7].mxu0  ;;  %1225 = vmatpush3.bf16.msra.mxu1 %v1188_v49  ;;  %v379_v25 = vadd.f32 %v1031_v19, %v347_v23  ;;  %v586_v49 = vld [vmem:[#allocation11 + $0x70] sm:$0xff] }
 0x15a   :  { %v377_v21 = vadd.f32 %v345_v16, %v261_v20  ;;  %1078 = vmatprep.mubr.f32.mxu1 %v376_v18  ;;  %1218 = vmatprep.subr.bf16.mxu1 %v1192_v52  ;;  %v1212_v51 = vpack.c.bf16 %v587_v50, %v586_v49 }
 0x15c   :  { %1079 = vmatmul.mubr.f32.gmra.mrb[4].mxu1 %v377_v21  ;;  %1213 = vmatprep.subr.bf16.mxu0 %v1212_v51 }
 0x15d   :  { %1081 = vmatprep.mubr.f32.mxu1 %v378_v22  ;;  %1226 = vmatpush3.bf16.msra.mxu1 %v1192_v52  ;;  %v847_v52 = vld [vmem:[%s1564_s4] ss:$0 sm:$0xff] }
 0x15e   :  { %v1034_v26 = vpop.f32.mrb[8].mxu0  ;;  %1219 = vmatprep.subr.bf16.mxu1 %v1515_v55  ;;  %1215 = vmatpush3.bf16.msra.mxu0 %v1212_v51 }
 0x15f   :  { %v274_v27 = vpop.f32.mrb[9].mxu0  ;;  %v382_v34 = vadd.f32 %v1034_v26, %v350_v29 }
 0x160   :  { %v380_v30 = vadd.f32 %v348_v24, %v274_v27  ;;  %v1035_v31 = vpop.f32.mrb[10].mxu0  ;;  %1082 = vmatmul.mubr.f32.gmra.mrb[6].mxu1 %v379_v25 }
 0x161   :  { %v277_v32 = vpop.f32.mrb[11].mxu0  ;;  %1227 = vmatpush3.bf16.msra.mxu1 %v1515_v55  ;;  %v383_v37 = vadd.f32 %v1035_v31, %v351_v35 }
 0x162   :  { %v381_v33 = vadd.f32 %v349_v28, %v277_v32  ;;  %1084 = vmatprep.mubr.f32.mxu1 %v380_v30  ;;  %1220 = vmatprep.subr.bf16.mxu1 %v1518_v58 }
 0x164   :  { %1085 = vmatmul.mubr.f32.gmra.mrb[8].mxu1 %v381_v33 }
 0x165   :  { %1087 = vmatprep.mubr.f32.mxu1 %v382_v34  ;;  %1228 = vmatpush3.bf16.msra.mxu1 %v1518_v58 }
 0x166   :  { %v1038_v38 = vpop.f32.mrb[12].mxu0  ;;  %1221 = vmatprep.subr.bf16.mxu1 %v1522_v61 }
 0x167   :  { %v290_v39 = vpop.f32.mrb[13].mxu0  ;;  %v386_v46 = vadd.f32 %v1038_v38, %v354_v41 }
 0x168   :  { %v384_v42 = vadd.f32 %v352_v36, %v290_v39  ;;  %v1039_v43 = vpop.f32.mrb[14].mxu0  ;;  %1088 = vmatmul.mubr.f32.gmra.mrb[10].mxu1 %v383_v37  ;;  %v848_v37 = vld [vmem:[%s1566_s6] ss:$0 sm:$0xff]  ;;  %s1399_s6 = smov [#allocation12]  }
 0x169   :  { %v293_v44 = vpop.f32.mrb[15].mxu0  ;;  %1229 = vmatpush3.bf16.msra.mxu1 %v1522_v61  ;;  %v387_v48 = vadd.f32 %v1039_v43, %v355_v47  ;;  %s825_s20 = sshll.u32 %s1399_s6, 4  ;;  %s826_s20 = int_to_ptr.vmem [resolvable:$true] %s825_s20 }
 0x16a   :  { %v385_v45 = vadd.f32 %v353_v40, %v293_v44  ;;  %1090 = vmatprep.mubr.f32.mxu1 %v384_v42  ;;  %1222 = vmatprep.subr.bf16.mxu1 %v1526_v0  ;;  %s1360_s21 = scalar_lea.vmem %s826_s20, 1024  ;;  %p1365_p13 = scmp.lt.s32.totalorder %s826_s20, %s826_s20 }
 0x16b   :  { %p1361_p12 = scmp.ne.s32.totalorder %s826_s20, %s1360_s21  ;;  %p1366_p0 = scmp.lt.s32.totalorder %s1360_s21, %s1360_s21 }
 0x16c   :  { %1091 = vmatmul.mubr.f32.gmra.mrb[12].mxu1 %v385_v45 }
 0x16d   :  { %1093 = vmatprep.mubr.f32.mxu1 %v386_v46  ;;  %1230 = vmatpush3.bf16.msra.mxu1 %v1526_v0  ;;  %p1367_p1 = por %p1366_p0, %p1365_p13 }
 0x16e   :  { %1223 = vmatprep.subr.bf16.mxu1 %v1212_v51 }
 0x16f   :  { %p1368_p2 = pnand %p1367_p1, %p1361_p12 }
 0x170   :  { %1094 = vmatmul.mubr.f32.gmra.mrb[14].mxu1 %v387_v48 }
 0x171   :  { %1231 = vmatpush3.bf16.msra.mxu1 %v1212_v51 }
 0x227   :  { %v1074_v53 = vpop.f32.mrb[0].mxu1 }
 0x228   :  { %v483_v54 = vadd.f32 %v1074_v53, %v847_v52  ;;  %v477_v55 = vpop.f32.mrb[1].mxu1 }
 0x229   :  { %v478_v56 = vadd.f32 %v847_v52, %v477_v55 }
 0x22a   :  { %v557_v59 = vmax.f32 %v483_v54, 0.0 }
 0x22b   :  { %v556_v57 = vmax.f32 %v478_v56, 0.0  ;;  %v1077_v58 = vpop.f32.mrb[2].mxu1 }
 0x22c   :  { %v493_v60 = vadd.f32 %v1077_v58, %v847_v52  ;;  %v487_v61 = vpop.f32.mrb[3].mxu1 }
 0x22d   :  { %v488_v62 = vadd.f32 %v847_v52, %v487_v61  ;;  %1128 = vmatprep.mubr.f32.mxu0 %v556_v57 }
 0x22e   :  { %1129 = vmatmul.mubr.f32.vlgmr.msra.gmra.mrb[16].mxu0 %v557_v59  ;;  %v559_v1 = vmax.f32 %v493_v60, 0.0 }
 0x22f   :  { %v558_v63 = vmax.f32 %v488_v62, 0.0  ;;  %v1080_v0 = vpop.f32.mrb[4].mxu1 }
 0x230   :  { %v503_v2 = vadd.f32 %v1080_v0, %v847_v52  ;;  %v497_v3 = vpop.f32.mrb[5].mxu1 }
 0x231   :  { %v498_v4 = vadd.f32 %v847_v52, %v497_v3  ;;  %1131 = vmatprep.mubr.f32.mxu0 %v558_v63 }
 0x232   :  { %1132 = vmatmul.mubr.f32.gmra.mrb[18].mxu0 %v559_v1  ;;  %v561_v7 = vmax.f32 %v503_v2, 0.0 }
 0x233   :  { %v560_v5 = vmax.f32 %v498_v4, 0.0  ;;  %v1083_v6 = vpop.f32.mrb[6].mxu1 }
 0x234   :  { %v513_v8 = vadd.f32 %v1083_v6, %v847_v52  ;;  %v507_v9 = vpop.f32.mrb[7].mxu1 }
 0x235   :  { %v508_v10 = vadd.f32 %v847_v52, %v507_v9  ;;  %1134 = vmatprep.mubr.f32.mxu0 %v560_v5 }
 0x236   :  { %1135 = vmatmul.mubr.f32.gmra.mrb[20].mxu0 %v561_v7  ;;  %v563_v13 = vmax.f32 %v513_v8, 0.0 }
 0x237   :  { %v562_v11 = vmax.f32 %v508_v10, 0.0  ;;  %v1086_v12 = vpop.f32.mrb[8].mxu1 }
 0x238   :  { %v523_v14 = vadd.f32 %v1086_v12, %v847_v52  ;;  %v517_v15 = vpop.f32.mrb[9].mxu1 }
 0x239   :  { %v518_v16 = vadd.f32 %v847_v52, %v517_v15  ;;  %1137 = vmatprep.mubr.f32.mxu0 %v562_v11 }
 0x23a   :  { %1138 = vmatmul.mubr.f32.gmra.mrb[22].mxu0 %v563_v13  ;;  %v565_v19 = vmax.f32 %v523_v14, 0.0 }
 0x23b   :  { %v564_v17 = vmax.f32 %v518_v16, 0.0  ;;  %v1089_v18 = vpop.f32.mrb[10].mxu1 }
 0x23c   :  { %v533_v20 = vadd.f32 %v1089_v18, %v847_v52  ;;  %v527_v21 = vpop.f32.mrb[11].mxu1 }
 0x23d   :  { %v528_v22 = vadd.f32 %v847_v52, %v527_v21  ;;  %1140 = vmatprep.mubr.f32.mxu1 %v564_v17 }
 0x23e   :  { %1141 = vmatmul.mubr.f32.vlgmr.msra.gmra.mrb[16].mxu1 %v565_v19  ;;  %v567_v25 = vmax.f32 %v533_v20, 0.0 }
 0x23f   :  { %v566_v23 = vmax.f32 %v528_v22, 0.0  ;;  %v1092_v24 = vpop.f32.mrb[12].mxu1 }
 0x240   :  { %v543_v26 = vadd.f32 %v1092_v24, %v847_v52  ;;  %v537_v27 = vpop.f32.mrb[13].mxu1 }
 0x241   :  { %v538_v28 = vadd.f32 %v847_v52, %v537_v27  ;;  %1143 = vmatprep.mubr.f32.mxu1 %v566_v23 }
 0x242   :  { %1144 = vmatmul.mubr.f32.gmra.mrb[18].mxu1 %v567_v25  ;;  %v569_v31 = vmax.f32 %v543_v26, 0.0 }
 0x243   :  { %v568_v29 = vmax.f32 %v538_v28, 0.0  ;;  %v1095_v30 = vpop.f32.mrb[14].mxu1 }
 0x244   :  { %v553_v32 = vadd.f32 %v1095_v30, %v847_v52  ;;  %v547_v33 = vpop.f32.mrb[15].mxu1 }
 0x245   :  { %v548_v34 = vadd.f32 %v847_v52, %v547_v33  ;;  %1146 = vmatprep.mubr.f32.mxu1 %v568_v29 }
 0x246   :  { %1147 = vmatmul.mubr.f32.gmra.mrb[20].mxu1 %v569_v31  ;;  %v571_v36 = vmax.f32 %v553_v32, 0.0 }
 0x247   :  { %v570_v35 = vmax.f32 %v548_v34, 0.0 }
 0x249   :  { %1149 = vmatprep.mubr.f32.mxu1 %v570_v35 }
 0x24a   :  { %1150 = vmatmul.mubr.f32.gmra.mrb[22].mxu1 %v571_v36 }
 0x301   :  { %v1130_v38 = vpop.f32.mrb[16].mxu0 }
 0x302   :  { %v667_v39 = vadd.f32 %v1130_v38, %v848_v37  ;;  %v661_v40 = vpop.f32.mrb[17].mxu0 }
 0x303   :  { %v662_v41 = vadd.f32 %v848_v37, %v661_v40 }
 0x305   :  { %v884_v42 = vpack.c.bf16 %v667_v39, %v662_v41  ;;  %v1133_v43 = vpop.f32.mrb[18].mxu0 }
 0x306   :  { %v677_v44 = vadd.f32 %v1133_v43, %v848_v37  ;;  %v671_v45 = vpop.f32.mrb[19].mxu0 }
 0x307   :  { %885 = vst [vmem:[#allocation12] sm:$0xff] %v884_v42   ;;  %v672_v46 = vadd.f32 %v848_v37, %v671_v45 }
 0x309   :  { %v889_v47 = vpack.c.bf16 %v677_v44, %v672_v46  ;;  %v1136_v48 = vpop.f32.mrb[20].mxu0 }
 0x30a   :  { %v687_v49 = vadd.f32 %v1136_v48, %v848_v37  ;;  %v681_v50 = vpop.f32.mrb[21].mxu0 }
 0x30b   :  { %921 = vst [vmem:[#allocation12 + $0x8] sm:$0xff] %v889_v47   ;;  %v682_v51 = vadd.f32 %v848_v37, %v681_v50 }
 0x30d   :  { %v894_v52 = vpack.c.bf16 %v687_v49, %v682_v51  ;;  %v1139_v53 = vpop.f32.mrb[22].mxu0 }
 0x30e   :  { %v697_v54 = vadd.f32 %v1139_v53, %v848_v37  ;;  %v691_v55 = vpop.f32.mrb[23].mxu0 }
 0x30f   :  { %922 = vst [vmem:[#allocation12 + $0x10] sm:$0xff] %v894_v52   ;;  %v692_v56 = vadd.f32 %v848_v37, %v691_v55 }
 0x311   :  { %v899_v57 = vpack.c.bf16 %v697_v54, %v692_v56  ;;  %v1142_v58 = vpop.f32.mrb[16].mxu1 }
 0x312   :  { %v707_v59 = vadd.f32 %v1142_v58, %v848_v37  ;;  %v701_v60 = vpop.f32.mrb[17].mxu1 }
 0x313   :  { %923 = vst [vmem:[#allocation12 + $0x18] sm:$0xff] %v899_v57   ;;  %v702_v61 = vadd.f32 %v848_v37, %v701_v60 }
 0x315   :  { %v904_v62 = vpack.c.bf16 %v707_v59, %v702_v61  ;;  %v1145_v63 = vpop.f32.mrb[18].mxu1 }
 0x316   :  { %v717_v0 = vadd.f32 %v1145_v63, %v848_v37  ;;  %v711_v1 = vpop.f32.mrb[19].mxu1 }
 0x317   :  { %924 = vst [vmem:[#allocation12 + $0x20] sm:$0xff] %v904_v62   ;;  %v712_v2 = vadd.f32 %v848_v37, %v711_v1 }
 0x319   :  { %v909_v3 = vpack.c.bf16 %v717_v0, %v712_v2  ;;  %v1148_v4 = vpop.f32.mrb[20].mxu1 }
 0x31a   :  { %v727_v5 = vadd.f32 %v1148_v4, %v848_v37  ;;  %v721_v6 = vpop.f32.mrb[21].mxu1 }
 0x31b   :  { %925 = vst [vmem:[#allocation12 + $0x28] sm:$0xff] %v909_v3   ;;  %v722_v7 = vadd.f32 %v848_v37, %v721_v6 }
 0x31d   :  { %v914_v8 = vpack.c.bf16 %v727_v5, %v722_v7  ;;  %v1151_v9 = vpop.f32.mrb[22].mxu1 }
 0x31e   :  { %v737_v10 = vadd.f32 %v1151_v9, %v848_v37  ;;  %v731_v11 = vpop.f32.mrb[23].mxu1 }
 0x31f   :  { %926 = vst [vmem:[#allocation12 + $0x30] sm:$0xff] %v914_v8   ;;  %v732_v12 = vadd.f32 %v848_v37, %v731_v11 }
 0x321   :  { %v919_v13 = vpack.c.bf16 %v737_v10, %v732_v12 }
 0x323   :  { %927 = vst [vmem:[#allocation12 + $0x38] sm:$0xff] %v919_v13  }
 0x324   :  { %1371 = shalt.err (!%p1368_p2)
}
 0x325   :  { %s1372_s24 = scalar_lea.hbm %s1567_s7, 1024 }
 0x326   :  { %p1373_p3 = scmp.ne.s32.totalorder %s1567_s7, %s1372_s24  ;;  %p1376_p4 = scmp.lt.u32.totalorder %s1372_s24, %s1567_s7 }
 0x328   :  { %p1378_p5 = pnand %p1376_p4, %p1373_p3 }
 0x32a   :  { %1381 = shalt.err (!%p1378_p5)
}
 0x32b   :  { %831 = dma.vmem_to_hbm [thread:$0]  %s826_s20, 1024, %s1567_s7, [#allocation5], %s1391_s11, %s1391_s11, %s1392_s12  }
 0x32c   :  { %1388 = dma.done.wait [#allocation5], 1024  }
 0x32d   :  { %1389 = vsyncadd [#allocation5], 4294966272 }
 0x32e   :  { %835 = vsyncpa [#allocation4], 1 }
 0x32f   :  { %836 = vsyncpa [#allocation7], 1 }
 0x330   :  { %837 = vsyncpa [#allocation10], 1 }
 0x331   :  { %838 = vsyncpa [#allocation5], 1 }

</bundles_post_ra>
